<compile_context>
chip_gen: v6e
topology: v6e:2x2x1
jax: 0.10.0
libtpu: 0.0.40
codegen_flags: <defaults>
</compile_context>

<pallas_src>
import jax
import jax.numpy as jnp
from jax.experimental import pallas as pl
from jax.experimental.pallas import tpu as pltpu


def _round_up(v, m):
    return ((v + m - 1) // m) * m


def _make_scores_kernel(hidden_pad, n_classes, n_patches, tile_rows, compute_dtype):
    Hp, C, N, TN = hidden_pad, n_classes, n_patches, tile_rows
    needs_mask = (N % TN) != 0

    def kernel(x_ref, wab_ref, bab_ref, wc_ref, bc_ref, raw_ref, m_ref, l_ref):
        j = pl.program_id(1)

        # x arrives in f32 (no wrapper-side cast pass over HBM); cast to bf16
        # in VMEM right before the MXU.  f32 accumulation, f32 VPU/EUP math.
        x = x_ref[0].astype(compute_dtype)                          # (TN, D)

        # Fused gating projection: ONE MXU pass yields both pre-activations.
        h = (jnp.dot(x, wab_ref[...], preferred_element_type=jnp.float32)
             + bab_ref[...])                                        # (TN, 2Hp) f32
        a = jnp.tanh(h[:, :Hp])          # Hp % 128 == 0 -> split is lane-aligned
        b = jax.nn.sigmoid(h[:, Hp:])
        gated = a * b                                               # (TN, Hp) f32

        if C == 1:
            # VPU multiply + lane reduce; avoids a degenerate 1-column MXU matmul.
            A = (jnp.sum(gated * wc_ref[...], axis=-1, keepdims=True)
                 + bc_ref[...])                                     # (TN, 1)
        else:
            A = (jnp.dot(gated, wc_ref[...], preferred_element_type=jnp.float32)
                 + bc_ref[...])                                     # (TN, C)

        if needs_mask:
            # Only emitted when N % TN != 0: padded tail rows must not reach
            # the softmax statistics (their raw-store is dropped by the
            # partial-block writeback anyway).
            row = jax.lax.broadcasted_iota(jnp.int32, A.shape, 0)
            A = jnp.where((j * TN + row) < N, A, -jnp.inf)

        raw_ref[0] = A.astype(raw_ref.dtype)

        # Per-tile softmax statistics.  Keeping them per-tile (instead of a
        # resident online-softmax accumulator) makes the patch-tile grid axis
        # fully 'parallel' -> megacore-friendly for B == 1; a tiny XLA
        # epilogue merges them.
        m_tile = jnp.max(A, axis=0, keepdims=True)                  # (1, C)
        l_tile = jnp.sum(jnp.exp(A - m_tile), axis=0, keepdims=True)
        m_ref[0, 0] = m_tile
        l_ref[0, 0] = l_tile

    return kernel


def batched_abmil_forward(x, wa, ba, wb, bb, wc, bc, *,
                          return_raw_attention=False,
                          activation="softmax",
                          compute_dtype=jnp.bfloat16,
                          max_tile_rows=1024):
    """BatchedABMIL forward.

    x: (B, N, D) float32.  Weights pre-transposed: wa/wb (D, H), wc (H, C);
    biases ba/bb (H,), bc (C,).
    """
    B, N, D = x.shape
    H = wa.shape[1]
    C = wc.shape[1]
    assert max_tile_rows % 8 == 0

    # Pad the hidden dim to a multiple of 128 lanes so the fused-weight split
    # falls on a lane-tile boundary.  Padding is inert:
    # tanh(0) * sigmoid(0) * wc_pad(=0) == 0.
    Hp = _round_up(H, 128)
    if Hp != H:
        pad = Hp - H
        wa = jnp.pad(wa, ((0, 0), (0, pad)))
        ba = jnp.pad(ba, ((0, pad),))
        wb = jnp.pad(wb, ((0, 0), (0, pad)))
        bb = jnp.pad(bb, ((0, pad),))
        wc = jnp.pad(wc, ((0, pad), (0, 0)))

    # Fuse the two gating projections into one (D, 2Hp) weight / bias so each
    # x tile makes a single MXU pass.  Weights are tiny; casting them here is
    # free.  x itself is cast inside the kernel (saves a full HBM pass).
    wab = jnp.concatenate([wa, wb], axis=1).astype(compute_dtype)           # (D, 2Hp)
    bab = jnp.concatenate([ba, bb], axis=0).reshape(1, 2 * Hp).astype(jnp.float32)
    bc2 = bc.reshape(1, C).astype(jnp.float32)

    if C == 1:
        wc_k = wc.reshape(1, Hp).astype(jnp.float32)                        # row vector
        wc_spec = pl.BlockSpec((1, Hp), lambda bi, j: (0, 0))
    else:
        wc_k = wc.astype(jnp.float32)
        wc_spec = pl.BlockSpec((Hp, C), lambda bi, j: (0, 0))

    # Patch-dimension tile.
    tn = N if N <= max_tile_rows else max_tile_rows
    nt = pl.cdiv(N, tn)

    # Right-size the VMEM budget: double-buffered f32 x tile + bf16 fused
    # weight + score/stat blocks + an allowance for the (TN, 2Hp) f32
    # in-kernel intermediates; clamped to 32-48 MiB (v7x physical VMEM is
    # 64 MiB, v5e/v6e have 128 MiB).
    need = (2 * tn * D * 4                       # x tile (f32), double buffered
            + 2 * D * (2 * Hp) * 2               # fused Wa|Wb (bf16)
            + 2 * (2 * Hp + Hp * max(C, 1) + 2 * C) * 4
            + 2 * tn * C * 4                     # raw score tile
            + 6 * tn * (2 * Hp) * 4)             # h / a / b / gated intermediates
    vmem_limit = int(min(max(need + (8 << 20), 32 << 20), 48 << 20))

    kernel = _make_scores_kernel(Hp, C, N, tn, compute_dtype)
    raw, m_t, l_t = pl.pallas_call(
        kernel,
        grid_spec=pltpu.PrefetchScalarGridSpec(
            num_scalar_prefetch=0,
            grid=(B, nt),
            in_specs=[
                pl.BlockSpec((1, tn, D), lambda bi, j: (bi, j, 0)),      # x tile (f32)
                pl.BlockSpec((D, 2 * Hp), lambda bi, j: (0, 0)),         # fused Wa|Wb
                pl.BlockSpec((1, 2 * Hp), lambda bi, j: (0, 0)),         # fused bias
                wc_spec,                                                 # Wc
                pl.BlockSpec((1, C), lambda bi, j: (0, 0)),              # bc
            ],
            out_specs=[
                pl.BlockSpec((1, tn, C), lambda bi, j: (bi, j, 0)),      # raw scores
                pl.BlockSpec((1, 1, 1, C), lambda bi, j: (bi, j, 0, 0)), # per-tile max
                pl.BlockSpec((1, 1, 1, C), lambda bi, j: (bi, j, 0, 0)), # per-tile sum-exp
            ],
        ),
        out_shape=(
            jax.ShapeDtypeStruct((B, N, C), jnp.float32),
            jax.ShapeDtypeStruct((B, nt, 1, C), jnp.float32),
            jax.ShapeDtypeStruct((B, nt, 1, C), jnp.float32),
        ),
        compiler_params=pltpu.CompilerParams(
            dimension_semantics=("parallel", "parallel"),
            vmem_limit_bytes=vmem_limit),
    )(x, wab, bab, wc_k, bc2)

    if activation == "softmax":
        # Tiny stat merge + one fused elementwise pass over the small
        # (B, N, C) score tensor; XLA runs this at roofline, so a second
        # pallas_call (per-step overhead dominated for such small blocks) is
        # not worth it.  Exact divide -> columns sum to 1 to f32 accuracy.
        m_all = jnp.max(m_t, axis=1, keepdims=True)                       # (B,1,1,C)
        l_all = jnp.sum(l_t * jnp.exp(m_t - m_all), axis=1, keepdims=True)
        activated = jnp.exp(raw - m_all[:, 0]) / l_all[:, 0]
    elif activation == "relu":
        activated = jax.nn.relu(raw)
    elif activation == "leaky_relu":
        activated = jax.nn.leaky_relu(raw)     # negative_slope=0.01, same as F.leaky_relu
    elif activation == "sigmoid":
        activated = jax.nn.sigmoid(raw)
    else:
        raise NotImplementedError("Activation not implemented.")
    # TODO(synk): dropout (p=0.25) inside attention_a/attention_b is a
    # training-time branch and is not implemented in this inference kernel.

    if return_raw_attention:
        return activated, raw
    return activated


def _reference(x, wa, ba, wb, bb, wc, bc, activation="softmax",
               compute_dtype=jnp.bfloat16):
    # Reference uses the same bf16-quantized x / Wa / Wb so the comparison
    # isolates kernel correctness from the (intentional) bf16 MXU cast.
    hp = jax.lax.Precision.HIGHEST
    xq = x.astype(compute_dtype).astype(jnp.float32)
    waq = wa.astype(compute_dtype).astype(jnp.float32)
    wbq = wb.astype(compute_dtype).astype(jnp.float32)
    a = jnp.tanh(jnp.einsum("bnd,dh->bnh", xq, waq, precision=hp) + ba)
    b = jax.nn.sigmoid(jnp.einsum("bnd,dh->bnh", xq, wbq, precision=hp) + bb)
    A = jnp.einsum("bnh,hc->bnc", a * b, wc, precision=hp) + bc
    if activation == "softmax":
        act = jax.nn.softmax(A, axis=1)
    elif activation == "sigmoid":
        act = jax.nn.sigmoid(A)
    else:
        raise NotImplementedError
    return act, A


if __name__ == "__main__":
    key = jax.random.PRNGKey(0)
    keys = jax.random.split(key, 14)

    # ---- test 1: B=2 bags, N=384 patches (3 N-tiles of 128), D=256, H=128, C=1 ----
    B, N, D, H, C = 2, 384, 256, 128, 1      # n_classes = 1 (module default)
    x = jax.random.normal(keys[0], (B, N, D), dtype=jnp.float32)
    wa = jax.random.normal(keys[1], (D, H), dtype=jnp.float32) * 0.05   # attention_a Linear
    ba = jax.random.normal(keys[2], (H,), dtype=jnp.float32) * 0.05
    wb = jax.random.normal(keys[3], (D, H), dtype=jnp.float32) * 0.05   # attention_b Linear
    bb = jax.random.normal(keys[4], (H,), dtype=jnp.float32) * 0.05
    wc = jax.random.normal(keys[5], (H, C), dtype=jnp.float32) * 0.05   # attention_c Linear
    bc = jax.random.normal(keys[6], (C,), dtype=jnp.float32) * 0.05

    activated, raw = batched_abmil_forward(
        x, wa, ba, wb, bb, wc, bc,
        return_raw_attention=True, max_tile_rows=128)
    activated = jax.block_until_ready(activated)
    raw = jax.block_until_ready(raw)

    ref_act, ref_raw = _reference(x, wa, ba, wb, bb, wc, bc)
    assert jnp.allclose(raw, ref_raw, atol=5e-4, rtol=5e-4), "raw attention mismatch"
    assert jnp.allclose(activated, ref_act, atol=5e-4, rtol=5e-3), "activated mismatch"
    assert jnp.allclose(jnp.sum(activated, axis=1), 1.0, atol=1e-4), "softmax not normalized"

    # sigmoid activation branch on the same inputs.
    act_sig = jax.block_until_ready(batched_abmil_forward(
        x, wa, ba, wb, bb, wc, bc, activation="sigmoid", max_tile_rows=128))
    ref_sig, _ = _reference(x, wa, ba, wb, bb, wc, bc, activation="sigmoid")
    assert jnp.allclose(act_sig, ref_sig, atol=5e-4, rtol=5e-3), "sigmoid mismatch"

    # ---- test 2: B=1 slide, ragged N=200 (masked tail tile), raw not returned ----
    B2, N2 = 1, 200
    x2 = jax.random.normal(keys[7], (B2, N2, D), dtype=jnp.float32)
    act2 = batched_abmil_forward(x2, wa, ba, wb, bb, wc, bc,
                                 return_raw_attention=False, max_tile_rows=128)
    act2 = jax.block_until_ready(act2)
    ref_act2, _ = _reference(x2, wa, ba, wb, bb, wc, bc)
    assert jnp.allclose(act2, ref_act2, atol=5e-4, rtol=5e-3), "ragged activated mismatch"
    assert jnp.allclose(jnp.sum(act2, axis=1), 1.0, atol=1e-4), "ragged softmax not normalized"

    # ---- test 3: H=96 (padded to 128), n_classes=3 (MXU score path), single tile ----
    B3, N3, H3, C3 = 2, 160, 96, 3
    x3 = jax.random.normal(keys[8], (B3, N3, D), dtype=jnp.float32)
    wa3 = jax.random.normal(keys[9], (D, H3), dtype=jnp.float32) * 0.05
    ba3 = jax.random.normal(keys[10], (H3,), dtype=jnp.float32) * 0.05
    wb3 = jax.random.normal(keys[11], (D, H3), dtype=jnp.float32) * 0.05
    bb3 = jax.random.normal(keys[12], (H3,), dtype=jnp.float32) * 0.05
    wc3 = jax.random.normal(keys[13], (H3, C3), dtype=jnp.float32) * 0.05
    bc3 = jnp.arange(C3, dtype=jnp.float32) * 0.01

    act3, raw3 = batched_abmil_forward(x3, wa3, ba3, wb3, bb3, wc3, bc3,
                                       return_raw_attention=True)
    act3 = jax.block_until_ready(act3)
    ref_act3, ref_raw3 = _reference(x3, wa3, ba3, wb3, bb3, wc3, bc3)
    assert jnp.allclose(raw3, ref_raw3, atol=5e-4, rtol=5e-4), "C>1 raw mismatch"
    assert jnp.allclose(act3, ref_act3, atol=5e-4, rtol=5e-3), "C>1 activated mismatch"
    assert jnp.allclose(jnp.sum(act3, axis=1), 1.0, atol=1e-4), "C>1 softmax not normalized"

    print("KERNEL_OK")
</pallas_src>

<mosaic_0001>
module attributes {stable_mosaic.version = 11 : i64} {
  func.func @kernel(%arg0: i32, %arg1: i32, %arg2: memref<1x128x256xf32, #tpu.memory_space<vmem>>, %arg3: memref<256x256xbf16, #tpu.memory_space<vmem>>, %arg4: memref<1x256xf32, #tpu.memory_space<vmem>>, %arg5: memref<1x128xf32, #tpu.memory_space<vmem>>, %arg6: memref<1x1xf32, #tpu.memory_space<vmem>>, %arg7: memref<1x128x1xf32, #tpu.memory_space<vmem>>, %arg8: memref<1x1x1x1xf32, #tpu.memory_space<vmem>>, %arg9: memref<1x1x1x1xf32, #tpu.memory_space<vmem>>) attributes {dimension_semantics = [#tpu.dimension_semantics<parallel>, #tpu.dimension_semantics<parallel>], iteration_bounds = array<i64: 2, 3>, scalar_prefetch = 0 : i64, scratch_operands = 0 : i64, tpu.core_type = #tpu.core_type<tc>, window_params = [{transform_indices = @transform_0, window_bounds = array<i64: 1, 128, 256>}, {pipeline_mode = #tpu.pipeline_mode<synchronous>, transform_indices = @transform_1, window_bounds = array<i64: 256, 256>}, {pipeline_mode = #tpu.pipeline_mode<synchronous>, transform_indices = @transform_2, window_bounds = array<i64: 1, 256>}, {pipeline_mode = #tpu.pipeline_mode<synchronous>, transform_indices = @transform_3, window_bounds = array<i64: 1, 128>}, {pipeline_mode = #tpu.pipeline_mode<synchronous>, transform_indices = @transform_4, window_bounds = array<i64: 1, 1>}, {transform_indices = @transform_5, window_bounds = array<i64: 1, 128, 1>}, {transform_indices = @transform_6, window_bounds = array<i64: 1, 1, 1, 1>}, {transform_indices = @transform_7, window_bounds = array<i64: 1, 1, 1, 1>}]} {
    %c0 = arith.constant 0 : index
    %c0_0 = arith.constant 0 : index
    %c0_1 = arith.constant 0 : index
    %0 = vector.load %arg2[%c0, %c0_0, %c0_1] : memref<1x128x256xf32, #tpu.memory_space<vmem>>, vector<1x128x256xf32>
    %1 = vector.shape_cast %0 : vector<1x128x256xf32> to vector<128x256xf32>
    %2 = arith.truncf %1 : vector<128x256xf32> to vector<128x256xbf16>
    %c0_2 = arith.constant 0 : index
    %c0_3 = arith.constant 0 : index
    %3 = vector.load %arg3[%c0_2, %c0_3] : memref<256x256xbf16, #tpu.memory_space<vmem>>, vector<256x256xbf16>
    %cst = arith.constant dense<0.000000e+00> : vector<128x256xf32>
    %4 = tpu.matmul %2, %3, %cst {dimension_numbers = #tpu.dot_dimension_numbers<[1], [0], [0], [1], [0, 0, 1, 1], [], []>} : vector<128x256xbf16>, vector<256x256xbf16>, vector<128x256xf32> -> vector<128x256xf32>
    %c0_4 = arith.constant 0 : index
    %c0_5 = arith.constant 0 : index
    %5 = vector.load %arg4[%c0_4, %c0_5] : memref<1x256xf32, #tpu.memory_space<vmem>>, vector<1x256xf32>
    %6 = vector.broadcast %5 : vector<1x256xf32> to vector<128x256xf32>
    %7 = arith.addf %4, %6 : vector<128x256xf32>
    %8 = vector.extract_strided_slice %7 {offsets = [0, 0], sizes = [128, 128], strides = [1, 1]} : vector<128x256xf32> to vector<128x128xf32>
    %9 = math.tanh %8 : vector<128x128xf32>
    %10 = vector.extract_strided_slice %7 {offsets = [0, 128], sizes = [128, 128], strides = [1, 1]} : vector<128x256xf32> to vector<128x128xf32>
    %11 = arith.negf %10 : vector<128x128xf32>
    %12 = math.exp %11 : vector<128x128xf32>
    %cst_6 = arith.constant 1.000000e+00 : f32
    %13 = vector.broadcast %cst_6 : f32 to vector<128x128xf32>
    %14 = arith.addf %13, %12 : vector<128x128xf32>
    %15 = arith.divf %13, %14 : vector<128x128xf32>
    %16 = arith.mulf %9, %15 : vector<128x128xf32>
    %c0_7 = arith.constant 0 : index
    %c0_8 = arith.constant 0 : index
    %17 = vector.load %arg5[%c0_7, %c0_8] : memref<1x128xf32, #tpu.memory_space<vmem>>, vector<1x128xf32>
    %18 = vector.broadcast %17 : vector<1x128xf32> to vector<128x128xf32>
    %19 = arith.mulf %16, %18 : vector<128x128xf32>
    %cst_9 = arith.constant dense<0.000000e+00> : vector<128xf32>
    %20 = vector.multi_reduction <add>, %19, %cst_9 [1] : vector<128x128xf32> to vector<128xf32>
    %21 = vector.shape_cast %20 : vector<128xf32> to vector<128x1xf32>
    %c0_10 = arith.constant 0 : index
    %c0_11 = arith.constant 0 : index
    %22 = vector.load %arg6[%c0_10, %c0_11] : memref<1x1xf32, #tpu.memory_space<vmem>>, vector<1x1xf32>
    %23 = vector.broadcast %22 : vector<1x1xf32> to vector<128x1xf32>
    %24 = arith.addf %21, %23 : vector<128x1xf32>
    %c0_12 = arith.constant 0 : index
    %c0_13 = arith.constant 0 : index
    %c0_14 = arith.constant 0 : index
    %25 = vector.load %arg7[%c0_12, %c0_13, %c0_14] : memref<1x128x1xf32, #tpu.memory_space<vmem>>, vector<1x128x1xf32>
    %26 = vector.shape_cast %25 : vector<1x128x1xf32> to vector<128x1xf32>
    %27 = vector.shape_cast %24 : vector<128x1xf32> to vector<1x128x1xf32>
    tpu.vector_store %arg7[%c0_12, %c0_13, %c0_14], %27 {strides = array<i32>} : memref<1x128x1xf32, #tpu.memory_space<vmem>>, vector<1x128x1xf32>,
    %cst_15 = arith.constant dense<0xFF800000> : vector<1xf32>
    %28 = vector.multi_reduction <maximumf>, %24, %cst_15 [0] : vector<128x1xf32> to vector<1xf32>
    %29 = vector.shape_cast %28 : vector<1xf32> to vector<1x1xf32>
    %30 = vector.broadcast %29 : vector<1x1xf32> to vector<128x1xf32>
    %31 = arith.subf %24, %30 : vector<128x1xf32>
    %32 = math.exp %31 : vector<128x1xf32>
    %cst_16 = arith.constant dense<0.000000e+00> : vector<1xf32>
    %33 = vector.multi_reduction <add>, %32, %cst_16 [0] : vector<128x1xf32> to vector<1xf32>
    %34 = vector.shape_cast %33 : vector<1xf32> to vector<1x1xf32>
    %c0_17 = arith.constant 0 : index
    %c0_18 = arith.constant 0 : index
    %c0_19 = arith.constant 0 : index
    %c0_20 = arith.constant 0 : index
    %35 = vector.load %arg8[%c0_17, %c0_18, %c0_19, %c0_20] : memref<1x1x1x1xf32, #tpu.memory_space<vmem>>, vector<1x1x1x1xf32>
    %36 = vector.shape_cast %35 : vector<1x1x1x1xf32> to vector<1x1xf32>
    %37 = vector.shape_cast %29 : vector<1x1xf32> to vector<1x1x1x1xf32>
    tpu.vector_store %arg8[%c0_17, %c0_18, %c0_19, %c0_20], %37 {strides = array<i32>} : memref<1x1x1x1xf32, #tpu.memory_space<vmem>>, vector<1x1x1x1xf32>,
    %c0_21 = arith.constant 0 : index
    %c0_22 = arith.constant 0 : index
    %c0_23 = arith.constant 0 : index
    %c0_24 = arith.constant 0 : index
    %38 = vector.load %arg9[%c0_21, %c0_22, %c0_23, %c0_24] : memref<1x1x1x1xf32, #tpu.memory_space<vmem>>, vector<1x1x1x1xf32>
    %39 = vector.shape_cast %38 : vector<1x1x1x1xf32> to vector<1x1xf32>
    %40 = vector.shape_cast %34 : vector<1x1xf32> to vector<1x1x1x1xf32>
    tpu.vector_store %arg9[%c0_21, %c0_22, %c0_23, %c0_24], %40 {strides = array<i32>} : memref<1x1x1x1xf32, #tpu.memory_space<vmem>>, vector<1x1x1x1xf32>,
    return
  }
  func.func @transform_0(%arg0: i32, %arg1: i32) -> (i32, i32, i32) {
    %c0_i32 = arith.constant 0 : i32
    %c0_i32_0 = arith.constant 0 : i32
    return %arg0, %arg1, %c0_i32 : i32, i32, i32
  }
  func.func @transform_1(%arg0: i32, %arg1: i32) -> (i32, i32) {
    %c0_i32 = arith.constant 0 : i32
    %c0_i32_0 = arith.constant 0 : i32
    %c0_i32_1 = arith.constant 0 : i32
    return %c0_i32, %c0_i32_0 : i32, i32
  }
  func.func @transform_2(%arg0: i32, %arg1: i32) -> (i32, i32) {
    %c0_i32 = arith.constant 0 : i32
    %c0_i32_0 = arith.constant 0 : i32
    %c0_i32_1 = arith.constant 0 : i32
    return %c0_i32, %c0_i32_0 : i32, i32
  }
  func.func @transform_3(%arg0: i32, %arg1: i32) -> (i32, i32) {
    %c0_i32 = arith.constant 0 : i32
    %c0_i32_0 = arith.constant 0 : i32
    %c0_i32_1 = arith.constant 0 : i32
    return %c0_i32, %c0_i32_0 : i32, i32
  }
  func.func @transform_4(%arg0: i32, %arg1: i32) -> (i32, i32) {
    %c0_i32 = arith.constant 0 : i32
    %c0_i32_0 = arith.constant 0 : i32
    %c0_i32_1 = arith.constant 0 : i32
    return %c0_i32, %c0_i32_0 : i32, i32
  }
  func.func @transform_5(%arg0: i32, %arg1: i32) -> (i32, i32, i32) {
    %c0_i32 = arith.constant 0 : i32
    %c0_i32_0 = arith.constant 0 : i32
    return %arg0, %arg1, %c0_i32 : i32, i32, i32
  }
  func.func @transform_6(%arg0: i32, %arg1: i32) -> (i32, i32, i32, i32) {
    %c0_i32 = arith.constant 0 : i32
    %c0_i32_0 = arith.constant 0 : i32
    %c0_i32_1 = arith.constant 0 : i32
    return %arg0, %arg1, %c0_i32, %c0_i32_0 : i32, i32, i32, i32
  }
  func.func @transform_7(%arg0: i32, %arg1: i32) -> (i32, i32, i32, i32) {
    %c0_i32 = arith.constant 0 : i32
    %c0_i32_0 = arith.constant 0 : i32
    %c0_i32_1 = arith.constant 0 : i32
    return %arg0, %arg1, %c0_i32, %c0_i32_0 : i32, i32, i32, i32
  }
}

</mosaic_0001>

<bundles_post_ra>
// kernel: tpu_custom_call.1
= control target key start
LH: loop header
LB: loop body
LE: loop exit
PB: predicated region body
PF: predicated region fallthrough
CT: control target
= control target key end

     0   :  { %s2283_s0 = inlined_call_operand.hbm [shape: f32[2,384,256], index: 0, kind: input, shape index: {}]   ;;  %s2284_s1 = inlined_call_operand.hbm [shape: bf16[256,256], index: 1, kind: input, shape index: {}]   ;;  %s2285_s2 = inlined_call_operand.vmem [shape: f32[1,256], index: 2, kind: input, shape index: {}]   ;;  %s2286_s3 = inlined_call_operand.vmem [shape: f32[1,128], index: 3, kind: input, shape index: {}]   ;;  %s2287_s4 = inlined_call_operand.<no memory space> [shape: f32[1,1], index: 4, kind: input, shape index: {}]   ;;  %s2288_s5 = inlined_call_operand.vmem [shape: f32[2,384,1], index: 5, kind: output, shape index: {0}]   ;;  %s2289_s6 = inlined_call_operand.vmem [shape: f32[2,3,1,1], index: 6, kind: output, shape index: {1}]   ;;  %s2290_s7 = inlined_call_operand.vmem [shape: f32[2,3,1,1], index: 7, kind: output, shape index: {2}]  }
   0x1   :  { %2294 = sst [smem:[#allocation12_spill]] %s2284_s1  ;;  %v13_v0 = vstv %s2287_s4 }
   0x2   :  { %2295 = sst [smem:[#allocation13_spill]] %s2290_s7  ;;  %14 = vst [vmem:[#allocation2] sm:$0x1] %v13_v0 }
   0x3   :  { %15 = vsyncpa [#allocation4], 0 }
   0x4   :  { %17 = vsyncpa [#allocation4 + $0x1], 0 }
   0x5   :  { %18 = vsyncpa [#allocation6], 0  ;;  %s1824_s26 = smov 0   ;;  %s1826_s27 = smov 0  }
   0x6   :  { %s1828_s28 = smov 0   ;;  %s1830_s29 = smov 0  }
   0x7   :  { %s1832_s30 = smov 0   ;;  %s1834_s8 = smov 0  }
   0x8   :  { %s1836_s9 = smov 0   ;;  %s1838_s10 = smov 0  }
   0x9 LB: > { %2296 = sst [smem:[#allocation9_spill]] %s1773_s10  ;;  %s1285_s4 = sadd.s32 4294967295, %s1773_s10   ;;  %s1773_s10 = sphi %s1838_s10, %s24_s10   ;;  %s1769_s9 = sphi %s1836_s9, %s2314_s9   ;;  %s1765_s8 = sphi %s1834_s8, %s2313_s8   ;;  %s1761_s30 = sphi %s1832_s30, %s2312_s30   ;;  %s1757_s29 = sphi %s1830_s29, %s2311_s29   ;;  %s1753_s28 = sphi %s1828_s28, %s2310_s28   ;;  %s1749_s27 = sphi %s1826_s27, %s2309_s27   ;;  %s1745_s26 = sphi %s1824_s26, %s2308_s26  }
   0xa   : > { %p58_p0 = scmp.ne.s32.totalorder %s1749_s27, %s1745_s26  ;;  %p1864_p1 = scmp.eq.s32.totalorder %s1285_s4, 0 }
   0xb   : > { %p1287_p2 = scmp.ge.s32.totalorder %s1773_s10, 1  ;;  %p237_p3 = scmp.lt.s32.totalorder %s1773_s10, 7 }
   0xc   : > { %p1872_p4 = por %p1864_p1, %p58_p0  ;;  %s1775_s14 = smov [#allocation5]  }
   0xd   : > { %p1876_p5 = pnand %p1287_p2, %p237_p3  ;;  %s249_s15 = sshll.u32 %s1775_s14, 4  ;;  %s250_s15 = int_to_ptr.vmem [resolvable:$true] %s249_s15 }
   0xe   : > { %s1660_s16 = scalar_lea.vmem %s250_s15, 4096  ;;  %p1668_p12 = scmp.lt.s32.totalorder %s250_s15, %s250_s15 }
   0xf   : > { %p1393_p6 = pneg %p1876_p5  ;;  %p1661_p9 = scmp.ne.s32.totalorder %s250_s15, %s1660_s16 }
  0x10   : > { %p1669_p13 = scmp.lt.s32.totalorder %s1660_s16, %s1660_s16 }
  0x11   : > { %p1394_p7 = pnand %p1393_p6, %p1864_p1 }
  0x12   : > { %p1670_p0 = por %p1669_p13, %p1668_p12 }
  0x13   : > { %p1651_p8 = pneg %p1394_p7 }
  0x15   : > { %p1663_p10 = pnand %p1661_p9, %p1651_p8 }
  0x17   : > { %p1664_p11 = pneg %p1663_p10 }
  0x19   : > { %p1671_p2 = pnand %p1670_p0, %p1664_p11 }
  0x1b   : > { %1674 = shalt.err (!%p1671_p2)
}
  0x1c   : > { %s1776_s17 = smov 128   ;;  %s1777_s18 = smov 8  }
  0x1d   : > { %s2300_s1 = sld [smem:[#allocation12_spill]]  ;;  %s33_s21 = sadd.s32 1, %s1765_s8 }
  0x1e   : > { %p34_p3 = scmp.ge.s32.totalorder %s33_s21, 3  ;;  %s36_s22 = sadd.s32 1, %s1769_s9 }
  0x1f   : > { %s45_s23 = sadd.s32 1, %s1753_s28  ;;  %p52_p6 = scmp.ne.s32.totalorder %s1753_s28, %s1749_s27 }
  0x20   : > { %s2316_s21 = smov (%p34_p3, %s33_s21), 0  ;;  %s2318_s22 = smov (!%p34_p3, %s36_s22), %s1769_s9 }
  0x21   : > { %2301 = sst [smem:[#allocation10_spill]] %s2316_s21  ;;  %s41_s24 = ssub.s32 %s1765_s8, %s2316_s21 }
  0x22   : > { %p53_p8 = scmp.eq.s32.totalorder %s1773_s10, 0  ;;  %p38_p9 = scmp.ge.s32.totalorder %s2318_s22, 2 }
  0x23   : > { %1396 = dma.hbm_to_vmem [thread:$0]  (!%p1394_p7), %s2300_s1, 4096, %s250_s15, [#allocation6], %s1776_s17, %s1776_s17, %s1777_s18  }
  0x24   : > { %p1402_p10 = scmp.lt.s32.totalorder %s1773_s10, 6  ;;  %p54_p11 = por %p53_p8, %p52_p6 }
  0x25   : > { %s272_s25 = sand.u32 1, %s1753_s28   ;;  %s2320_s22 = smov (%p38_p9, %s2318_s22), 0 }
  0x26   : > { %2302 = sst [smem:[#allocation11_spill]] %s2320_s22  ;;  %s1290_s26 = sshll.u32 %s272_s25, 8 }
  0x27   : > { %s40_s4 = ssub.s32 %s1769_s9, %s2320_s22  ;;  %s1351_s15 = sshll.u32 %s1765_s8, 5 }
  0x28   : > { %s42_s14 = sor.u32 %s41_s24, %s40_s4  ;;  %s1384_s16 = smul.u32 96, %s1769_s9 }
  0x29   : > { %p43_p7 = scmp.eq.s32.totalorder %s42_s14, 0  ;;  %s276_s17 = scalar_lea.vmem [#allocation3], %s1290_s26 }
  0x2a   : > { %s286_s18 = sshll.u32 %s276_s17, 4  ;;  %p1906_p12 = pnand %p1402_p10, %p54_p11  ;;  %s287_s18 = int_to_ptr.vmem [resolvable:$true] %s286_s18 }
  0x2b   : > { %s1911_s20 = scalar_select %p43_p7, %s1753_s28, %s45_s23  }
  0x2c   : > { %s283_s1 = sadd.s32 %s1384_s16, %s1351_s15  ;;  %s273_s24 = scalar_lea.sflag [#allocation4], %s272_s25 }
  0x2d   : > { %s1293_s21 = sshll.u32 %s283_s1, 7  ;;  %p1677_p13 = pneg %p1906_p12 }
  0x2e   : > { %s285_s22 = scalar_lea.hbm %s2283_s0, %s1293_s21  ;;  %s1688_s4 = scalar_lea.vmem %s287_s18, 4096 }
  0x2f   : > { %p1689_p0 = scmp.ne.s32.totalorder %s287_s18, %s1688_s4  ;;  %s1778_s26 = smov [#allocation3]  }
  0x30   : > { %s1693_s14 = sshll.u32 %s1778_s26, 4  ;;  %s1694_s14 = int_to_ptr.vmem [resolvable:$false] %s1693_s14 }
  0x31   : > { %p1691_p2 = pnand %p1689_p0, %p1677_p13  ;;  %s1695_s17 = scalar_lea.vmem %s1694_s14, 8192 }
  0x32   : > { %p1696_p6 = scmp.lt.s32.totalorder %s287_s18, %s1694_s14  ;;  %p1697_p8 = scmp.lt.s32.totalorder %s1695_s17, %s1688_s4 }
  0x33   : > { %p1692_p3 = pneg %p1691_p2 }
  0x34   : > { %p1698_p9 = por %p1697_p8, %p1696_p6 }
  0x36   : > { %p1699_p10 = pnand %p1698_p9, %p1692_p3 }
  0x38   : > { %1702 = shalt.err (!%p1699_p10)
}
  0x39   : > { %s1779_s1 = smov 256   ;;  %s1780_s7 = smov 16  }
  0x3a   : > { %1400 = dma.hbm_to_vmem [thread:$0]  (!%p1906_p12), %s285_s22, 4096, %s287_s18, %s273_s24, %s1779_s1, %s1779_s1, %s1780_s7  }
  0x3b   : > { %298 = sbr.rel (%p1876_p5) target bundleno = 628 (0x274), region = 40  ;;  %s300_s10 = sand.u32 (!%p1876_p5), 1, %s1749_s27  }
  0x3c   : > { %s1295_s21 = sshll.u32 (!%p1876_p5), %s300_s10, 8  ;;  %s301_s23 = scalar_lea.sflag (!%p1876_p5), [#allocation4], %s300_s10 }
  0x3d   : > { %s1923_s25 = scalar_lea.vmem (!%p1876_p5), [#allocation3], %s1295_s21 }
  0x40   : > { %1736 = dma.done.wait (%p1872_p4), %s301_s23, 4096  }
  0x41   : > { %1738 = vsyncadd (%p1872_p4), %s301_s23, 4294963200 }
  0x42   : > { %1740 = dma.done.wait (%p1864_p1), [#allocation6], 4096  }
  0x43   : > { %1742 = vsyncadd (%p1864_p1), [#allocation6], 4294963200  ;;  %v1473_v1 = vld [vmem:[#allocation5 + $0x74] ss:$8 sps:$4 sm:$0xff]   ;;  %v1475_v2 = vld [vmem:[#allocation5 + $0x70] ss:$8 sps:$4 sm:$0xff]  }
  0x44   : > { %634 = vmatprep.subr.bf16.mxu0 %v1473_v1  ;;  %1352 = vmatprep.subr.bf16.mxu1 %v1473_v1  ;;  %v1476_v3 = vld [vmem:[#allocation5 + $0x64] ss:$8 sps:$4 sm:$0xff]   ;;  %v1478_v4 = vld [vmem:[#allocation5 + $0x60] ss:$8 sps:$4 sm:$0xff]   ;;  %v1479_v5 = vld [vmem:[#allocation5 + $0x54] ss:$8 sps:$4 sm:$0xff]  }
  0x45   : > { %635 = vmatpush1.bf16.msra.mxu0 %v1475_v2  ;;  %1368 = vmatpush1.bf16.msra.mxu1 %v1475_v2  ;;  %v1481_v6 = vld [vmem:[#allocation5 + $0x50] ss:$8 sps:$4 sm:$0xff]   ;;  %v1482_v7 = vld [vmem:[#allocation5 + $0x44] ss:$8 sps:$4 sm:$0xff]   ;;  %v1484_v8 = vld [vmem:[#allocation5 + $0x40] ss:$8 sps:$4 sm:$0xff]  }
  0x46   : > { %636 = vmatprep.subr.bf16.mxu0 %v1476_v3  ;;  %1353 = vmatprep.subr.bf16.mxu1 %v1476_v3  ;;  %v1485_v9 = vld [vmem:[#allocation5 + $0x34] ss:$8 sps:$4 sm:$0xff]   ;;  %v1487_v10 = vld [vmem:[#allocation5 + $0x30] ss:$8 sps:$4 sm:$0xff]   ;;  %v1488_v11 = vld [vmem:[#allocation5 + $0x24] ss:$8 sps:$4 sm:$0xff]  }
  0x47   : > { %v1490_v12 = vld [vmem:[#allocation5 + $0x20] ss:$8 sps:$4 sm:$0xff]   ;;  %v1491_v13 = vld [vmem:[#allocation5 + $0x14] ss:$8 sps:$4 sm:$0xff]   ;;  %v1493_v19 = vld [vmem:[#allocation5 + $0x10] ss:$8 sps:$4 sm:$0xff]  }
  0x48   : > { %v383_v14 = vld [vmem:[%s1923_s25 + $0x8] sm:$0xff]  ;;  %v385_v15 = vld [vmem:[%s1923_s25 + $0x18] sm:$0xff]  ;;  %v382_v39 = vld [vmem:[%s1923_s25] sm:$0xff]  ;;  %s1297_s15 = sshll.u32 %s1757_s29, 4  ;;  %p359_p1 = scmp.lt.s32.totalorder %s1761_s30, 1  ;;  %vm953_vm0 = vcmask 7168  }
  0x49   : > { %637 = vmatpush1.bf16.msra.mxu0 %v1478_v4  ;;  %1369 = vmatpush1.bf16.msra.mxu1 %v1478_v4  ;;  %v415_v16 = vpack.c.bf16 %v385_v15, %v383_v14  ;;  %v399_v17 = vld [vmem:[%s1923_s25 + $0x88] sm:$0xff]  ;;  %v401_v18 = vld [vmem:[%s1923_s25 + $0x98] sm:$0xff]  ;;  %v384_v40 = vld [vmem:[%s1923_s25 + $0x10] sm:$0xff]  ;;  %p361_p4 = scmp.lt.s32.totalorder %s1297_s15, 47  ;;  %p370_p5 = scmp.lt.s32.totalorder %s1757_s29, 2  ;;  %vm1092_vm1 = vcmask 0  }
  0x4a   : > { %638 = vmatprep.subr.bf16.mxu0 %v1479_v5  ;;  %1354 = vmatprep.subr.bf16.mxu1 %v1479_v5  ;;  %v423_v20 = vpack.c.bf16 %v401_v18, %v399_v17  ;;  %v1494_v21 = vld [vmem:[#allocation5 + $0x4] ss:$8 sps:$4 sm:$0xff]   ;;  %v1496_v22 = vld [vmem:[#allocation5] ss:$8 sps:$4 sm:$0xff]   ;;  %v1497_v23 = vld [vmem:[#allocation5 + $0xf4] ss:$8 sps:$4 sm:$0xff]   ;;  %v414_v47 = vpack.c.bf16 %v384_v40, %v382_v39  ;;  %v464_v17 = vlaneseq }
  0x4b   : > { %666 = vmatprep.mubr.bf16.mxu0 %v415_v16  ;;  %v1499_v24 = vld [vmem:[#allocation5 + $0xf0] ss:$8 sps:$4 sm:$0xff]   ;;  %v1500_v25 = vld [vmem:[#allocation5 + $0xe4] ss:$8 sps:$4 sm:$0xff]   ;;  %v1502_v26 = vld [vmem:[#allocation5 + $0xe0] ss:$8 sps:$4 sm:$0xff]  }
  0x4c   : > { %706 = vmatprep.mubr.bf16.mxu1 %v423_v20  ;;  %v1503_v27 = vld [vmem:[#allocation5 + $0xd4] ss:$8 sps:$4 sm:$0xff]   ;;  %v1505_v28 = vld [vmem:[#allocation5 + $0xd0] ss:$8 sps:$4 sm:$0xff]   ;;  %v1506_v29 = vld [vmem:[#allocation5 + $0xc4] ss:$8 sps:$4 sm:$0xff]  }
  0x4d   : > { %639 = vmatpush1.bf16.msra.mxu0 %v1481_v6  ;;  %1370 = vmatpush1.bf16.msra.mxu1 %v1481_v6  ;;  %v1508_v30 = vld [vmem:[#allocation5 + $0xc0] ss:$8 sps:$4 sm:$0xff]   ;;  %v1509_v31 = vld [vmem:[#allocation5 + $0xb4] ss:$8 sps:$4 sm:$0xff]   ;;  %v1511_v32 = vld [vmem:[#allocation5 + $0xb0] ss:$8 sps:$4 sm:$0xff]  }
  0x4e   : > { %640 = vmatprep.subr.bf16.mxu0 %v1482_v7  ;;  %1355 = vmatprep.subr.bf16.mxu1 %v1482_v7  ;;  %v1512_v33 = vld [vmem:[#allocation5 + $0xa4] ss:$8 sps:$4 sm:$0xff]   ;;  %v1514_v34 = vld [vmem:[#allocation5 + $0xa0] ss:$8 sps:$4 sm:$0xff]   ;;  %v1515_v35 = vld [vmem:[#allocation5 + $0x94] ss:$8 sps:$4 sm:$0xff]  }
  0x4f   : > { %v1517_v36 = vld [vmem:[#allocation5 + $0x90] ss:$8 sps:$4 sm:$0xff]   ;;  %v1518_v37 = vld [vmem:[#allocation5 + $0x84] ss:$8 sps:$4 sm:$0xff]   ;;  %v1520_v38 = vld [vmem:[#allocation5 + $0x80] ss:$8 sps:$4 sm:$0xff]  }
  0x50   : > { %v398_v41 = vld [vmem:[%s1923_s25 + $0x80] sm:$0xff]  ;;  %v400_v42 = vld [vmem:[%s1923_s25 + $0x90] sm:$0xff]  ;;  %v387_v43 = vld [vmem:[%s1923_s25 + $0x28] sm:$0xff]  ;;  %v465_v18 = vshrl.u32 %v464_v17, 7  ;;  %s2322_s30 = smov (!%p359_p1, %s1761_s30), 1  ;;  %s2324_s15 = smov (!%p361_p4, %s1297_s15), 47 }
  0x51   : > { %641 = vmatpush1.bf16.msra.mxu0 %v1484_v8  ;;  %1371 = vmatpush1.bf16.msra.mxu1 %v1484_v8  ;;  %v389_v44 = vld [vmem:[%s1923_s25 + $0x38] sm:$0xff]  ;;  %v403_v45 = vld [vmem:[%s1923_s25 + $0xa8] sm:$0xff]  ;;  %v422_v48 = vpack.c.bf16 %v400_v42, %v398_v41  ;;  %v386_v51 = vld [vmem:[%s1923_s25 + $0x20] sm:$0xff]  ;;  %s1385_s16 = smul.u32 48, %s2322_s30  ;;  %s2326_s29 = smov (!%p370_p5, %s1757_s29), 2 }
  0x52   : > { %642 = vmatprep.subr.bf16.mxu0 %v1485_v9  ;;  %1356 = vmatprep.subr.bf16.mxu1 %v1485_v9  ;;  %v405_v46 = vld [vmem:[%s1923_s25 + $0xb8] sm:$0xff]  ;;  %v417_v49 = vpack.c.bf16 %v389_v44, %v387_v43  ;;  %v388_v52 = vld [vmem:[%s1923_s25 + $0x30] sm:$0xff]  ;;  %v402_v53 = vld [vmem:[%s1923_s25 + $0xa0] sm:$0xff]  ;;  %s1386_s14 = smul.u32 3, %s2322_s30  ;;  %s2304_s21 = sld [smem:[#allocation13_spill]] }
  0x53   : > { %v425_v50 = vpack.c.bf16 %v405_v46, %v403_v45  ;;  %v404_v54 = vld [vmem:[%s1923_s25 + $0xb0] sm:$0xff]  ;;  %v391_v55 = vld [vmem:[%s1923_s25 + $0x48] sm:$0xff]  ;;  %v393_v56 = vld [vmem:[%s1923_s25 + $0x58] sm:$0xff]  ;;  %v416_v59 = vpack.c.bf16 %v388_v52, %v386_v51  ;;  %s364_s18 = sadd.s32 %s1385_s16, %s2324_s15 }
  0x54   : > { %v407_v57 = vld [vmem:[%s1923_s25 + $0xc8] sm:$0xff]  ;;  %v409_v58 = vld [vmem:[%s1923_s25 + $0xd8] sm:$0xff]  ;;  %v424_v60 = vpack.c.bf16 %v404_v54, %v402_v53  ;;  %v419_v61 = vpack.c.bf16 %v393_v56, %v391_v55  ;;  %v390_v63 = vld [vmem:[%s1923_s25 + $0x40] sm:$0xff]  ;;  %s1298_s19 = sshll.u32 %s364_s18, 3  ;;  %s2196_s17 = sadd.s32 %s1386_s14, %s2326_s29 }
  0x55   : > { %643 = vmatpush1.bf16.msra.mxu0 %v1487_v10  ;;  %1372 = vmatpush1.bf16.msra.mxu1 %v1487_v10  ;;  %v427_v62 = vpack.c.bf16 %v409_v58, %v407_v57  ;;  %v392_v0 = vld [vmem:[%s1923_s25 + $0x50] sm:$0xff]  ;;  %v406_v1 = vld [vmem:[%s1923_s25 + $0xc0] sm:$0xff]  ;;  %v395_v3 = vld [vmem:[%s1923_s25 + $0x68] sm:$0xff]  ;;  %s2063_s26 = scalar_lea.vmem %s2288_s5, %s1298_s19  ;;  %s374_s10 = scalar_lea.vmem %s2289_s6, %s2196_s17 }
  0x56   : > { %644 = vmatprep.subr.bf16.mxu0 %v1488_v11  ;;  %1357 = vmatprep.subr.bf16.mxu1 %v1488_v11  ;;  %v408_v2 = vld [vmem:[%s1923_s25 + $0xd0] sm:$0xff]  ;;  %v397_v4 = vld [vmem:[%s1923_s25 + $0x78] sm:$0xff]  ;;  %v411_v5 = vld [vmem:[%s1923_s25 + $0xe8] sm:$0xff]  ;;  %v418_v7 = vpack.c.bf16 %v392_v0, %v390_v63 }
  0x57   : > { %v413_v6 = vld [vmem:[%s1923_s25 + $0xf8] sm:$0xff]  ;;  %v426_v8 = vpack.c.bf16 %v408_v2, %v406_v1  ;;  %v421_v9 = vpack.c.bf16 %v397_v4, %v395_v3  ;;  %v394_v11 = vld [vmem:[%s1923_s25 + $0x60] sm:$0xff]  ;;  %v412_v14 = vld [vmem:[%s1923_s25 + $0xf0] sm:$0xff] }
  0x58   : > { %v429_v10 = vpack.c.bf16 %v413_v6, %v411_v5  ;;  %v462_v20 = vld [vmem:[%s2285_s2] sm:$0x3]  ;;  %s381_s23 = scalar_lea.vmem %s2304_s21, %s2196_s17 }
  0x59   : > { %645 = vmatpush1.bf16.msra.mxu0 %v1490_v12  ;;  %1373 = vmatpush1.bf16.msra.mxu1 %v1490_v12  ;;  %v396_v12 = vld [vmem:[%s1923_s25 + $0x70] sm:$0xff] }
  0x5a   : > { %646 = vmatprep.subr.bf16.mxu0 %v1491_v13  ;;  %1358 = vmatprep.subr.bf16.mxu1 %v1491_v13  ;;  %v410_v13 = vld [vmem:[%s1923_s25 + $0xe0] sm:$0xff]  ;;  %v420_v15 = vpack.c.bf16 %v396_v12, %v394_v11 }
  0x5b   : > { %v428_v16 = vpack.c.bf16 %v412_v14, %v410_v13 }
  0x5d   : > { %647 = vmatpush1.bf16.msra.mxu0 %v1493_v19  ;;  %1374 = vmatpush1.bf16.msra.mxu1 %v1493_v19  ;;  %v470_v19 = vsub.s32 1, %v465_v18 }
  0x5e   : > { %648 = vmatprep.subr.bf16.mxu0 %v1494_v21  ;;  %1359 = vmatprep.subr.bf16.mxu1 %v1494_v21 }
  0x5f   : > { %v1968_v21 = vrot.slane %v462_v20, %v470_v19 }
  0x61   : > { %649 = vmatpush1.bf16.msra.mxu0 %v1496_v22  ;;  %1375 = vmatpush1.bf16.msra.mxu1 %v1496_v22 }
  0x62   : > { %650 = vmatprep.subr.bf16.mxu0 %v1497_v23  ;;  %1360 = vmatprep.subr.bf16.mxu1 %v1497_v23 }
  0x65   : > { %651 = vmatpush2.bf16.msra.mxu0 %v1499_v24  ;;  %1376 = vmatpush2.bf16.msra.mxu1 %v1499_v24  ;;  %v466_v24 = vsub.s32 0, %v465_v18 }
  0x66   : > { %652 = vmatprep.subr.bf16.mxu0 %v1500_v25  ;;  %1361 = vmatprep.subr.bf16.mxu1 %v1500_v25 }
  0x69   : > { %653 = vmatpush2.bf16.msra.mxu0 %v1502_v26  ;;  %1377 = vmatpush2.bf16.msra.mxu1 %v1502_v26 }
  0x6a   : > { %654 = vmatprep.subr.bf16.mxu0 %v1503_v27  ;;  %1362 = vmatprep.subr.bf16.mxu1 %v1503_v27 }
  0x6d   : > { %655 = vmatpush2.bf16.msra.mxu0 %v1505_v28  ;;  %1378 = vmatpush2.bf16.msra.mxu1 %v1505_v28 }
  0x6e   : > { %656 = vmatprep.subr.bf16.mxu0 %v1506_v29  ;;  %1363 = vmatprep.subr.bf16.mxu1 %v1506_v29 }
  0x71   : > { %657 = vmatpush2.bf16.msra.mxu0 %v1508_v30  ;;  %1379 = vmatpush2.bf16.msra.mxu1 %v1508_v30 }
  0x72   : > { %658 = vmatprep.subr.bf16.mxu0 %v1509_v31  ;;  %1364 = vmatprep.subr.bf16.mxu1 %v1509_v31 }
  0x75   : > { %659 = vmatpush2.bf16.msra.mxu0 %v1511_v32  ;;  %1380 = vmatpush2.bf16.msra.mxu1 %v1511_v32 }
  0x76   : > { %660 = vmatprep.subr.bf16.mxu0 %v1512_v33  ;;  %1365 = vmatprep.subr.bf16.mxu1 %v1512_v33  ;;  %v1972_v33 = vrot.slane %v462_v20, %v466_v24 }
  0x79   : > { %661 = vmatpush2.bf16.msra.mxu0 %v1514_v34  ;;  %1381 = vmatpush2.bf16.msra.mxu1 %v1514_v34 }
  0x7a   : > { %662 = vmatprep.subr.bf16.mxu0 %v1515_v35  ;;  %1366 = vmatprep.subr.bf16.mxu1 %v1515_v35 }
  0x7d   : > { %663 = vmatpush2.bf16.msra.mxu0 %v1517_v36  ;;  %1382 = vmatpush2.bf16.msra.mxu1 %v1517_v36 }
  0x7e   : > { %664 = vmatprep.subr.bf16.mxu0 %v1518_v37  ;;  %1367 = vmatprep.subr.bf16.mxu1 %v1518_v37 }
  0x81   : > { %665 = vmatpush2.bf16.msra.mxu0 %v1520_v38  ;;  %1383 = vmatpush2.bf16.msra.mxu1 %v1520_v38 }
  0x84   : > { %667 = vmatmul.mubr.bf16.vlgmr.msra.gmra.mxu0 %v414_v47  ;;  %707 = vmatmul.mubr.bf16.vlgmr.msra.gmra.mxu1 %v422_v48 }
  0x85   : > { %676 = vmatprep.mubr.bf16.mxu0 %v417_v49  ;;  %716 = vmatprep.mubr.bf16.mxu1 %v425_v50 }
  0x8c   : > { %677 = vmatmul.mubr.bf16.gmra.mxu0 %v416_v59  ;;  %717 = vmatmul.mubr.bf16.gmra.mxu1 %v424_v60 }
  0x8d   : > { %686 = vmatprep.mubr.bf16.mxu0 %v419_v61  ;;  %726 = vmatprep.mubr.bf16.mxu1 %v427_v62 }
  0x94   : > { %687 = vmatmul.mubr.bf16.gmra.mxu0 %v418_v7  ;;  %727 = vmatmul.mubr.bf16.gmra.mxu1 %v426_v8 }
  0x95   : > { %696 = vmatprep.mubr.bf16.mxu0 %v421_v9  ;;  %736 = vmatprep.mubr.bf16.mxu1 %v429_v10 }
  0x9c   : > { %697 = vmatmul.mubr.bf16.gmra.mxu0 %v420_v15  ;;  %737 = vmatmul.mubr.bf16.gmra.mxu1 %v428_v16 }
 0x144   : > { %v668_v22 = vpop.f32.mrf.mxu0  ;;  %v708_v23 = vpop.f32.mrf.mxu1 }
 0x145   : > { %v669_v42 = vadd.f32 %v668_v22, %v1972_v33  ;;  %v709_v49 = vadd.f32 %v708_v23, %v1972_v33 }
 0x146   : > { %v670_v25 = vpop.f32.mrf.mxu0  ;;  %v710_v26 = vpop.f32.mrf.mxu1 }
 0x147   : > { %v671_v27 = vadd.f32 %v670_v25, %v1968_v21  ;;  %v711_v28 = vadd.f32 %v710_v26, %v1968_v21 }
 0x148   : > { %v672_v29 = vpop.f32.mrf.mxu0  ;;  %v712_v30 = vpop.f32.mrf.mxu1 }
 0x149   : > { %v1331_v31 = vmul.f32 -1.442695, %v671_v27  ;;  %v1339_v32 = vmul.f32 -1.442695, %v711_v28  ;;  %v673_v52 = vadd.f32 %v672_v29, %v1972_v33  ;;  %v713_v59 = vadd.f32 %v712_v30, %v1972_v33 }
 0x14a   : > { %v674_v34 = vpop.f32.mrf.mxu0  ;;  %v714_v35 = vpop.f32.mrf.mxu1 }
 0x14b   : > { %1521 = vpow2.f32 %v1331_v31  ;;  %v675_v36 = vadd.f32 %v674_v34, %v1968_v21  ;;  %v715_v37 = vadd.f32 %v714_v35, %v1968_v21 }
 0x14c   : > { %1523 = vpow2.f32 %v1339_v32  ;;  %v678_v38 = vpop.f32.mrf.mxu0  ;;  %v718_v39 = vpop.f32.mrf.mxu1 }
 0x14d   : > { %v1332_v40 = vmul.f32 -1.442695, %v675_v36  ;;  %v1340_v41 = vmul.f32 -1.442695, %v715_v37  ;;  %v679_v62 = vadd.f32 %v678_v38, %v1972_v33  ;;  %v719_v18 = vadd.f32 %v718_v39, %v1972_v33 }
 0x14e   : > { %v680_v43 = vpop.f32.mrf.mxu0  ;;  %v720_v44 = vpop.f32.mrf.mxu1 }
 0x14f   : > { %1525 = vpow2.f32 %v1332_v40  ;;  %v681_v45 = vadd.f32 %v680_v43, %v1968_v21  ;;  %v721_v46 = vadd.f32 %v720_v44, %v1968_v21 }
 0x150   : > { %1527 = vpow2.f32 %v1340_v41  ;;  %v682_v47 = vpop.f32.mrf.mxu0  ;;  %v1979_v48 = vpop.f32.mrf.mxu1 }
 0x151   : > { %v1333_v50 = vmul.f32 -1.442695, %v681_v45  ;;  %v1341_v51 = vmul.f32 -1.442695, %v721_v46  ;;  %1529 = vtanh.f32 %v669_v42  ;;  %v683_v22 = vadd.f32 %v682_v47, %v1972_v33 }
 0x152   : > { %v684_v53 = vpop.f32.mrf.mxu0  ;;  %v724_v54 = vpop.f32.mrf.mxu1  ;;  %v723_v42 = vadd.f32 %v1979_v48, %v1972_v33  ;;  %v2018_v48 = vld [vmem:[%s2286_s3] ss:$0 sm:$0xff] }
 0x153   : > { %1531 = vpow2.f32 %v1333_v50  ;;  %v685_v55 = vadd.f32 %v684_v53, %v1968_v21  ;;  %v725_v56 = vadd.f32 %v724_v54, %v1968_v21 }
 0x154   : > { %1533 = vpow2.f32 %v1341_v51  ;;  %v1985_v57 = vpop.f32.mrf.mxu0  ;;  %v1987_v58 = vpop.f32.mrf.mxu1 }
 0x155   : > { %1535 = vtanh.f32 %v709_v49  ;;  %v1334_v60 = vmul.f32 -1.442695, %v685_v55  ;;  %v1342_v61 = vmul.f32 -1.442695, %v725_v56  ;;  %v689_v46 = vadd.f32 %v1985_v57, %v1972_v33 }
 0x156   : > { %1537 = vtanh.f32 %v673_v52  ;;  %v690_v63 = vpop.f32.mrf.mxu0  ;;  %v730_v0 = vpop.f32.mrf.mxu1 }
 0x157   : > { %1539 = vpow2.f32 %v1334_v60  ;;  %v691_v1 = vadd.f32 %v690_v63, %v1968_v21  ;;  %v731_v2 = vadd.f32 %v730_v0, %v1968_v21 }
 0x158   : > { %v1522_v3 = vpop.eup %1521  ;;  %1541 = vpow2.f32 %v1342_v61  ;;  %v1993_v4 = vpop.f32.mrf.mxu0 }
 0x159   : > { %v1995_v5 = vpop.f32.mrf.mxu1  ;;  %v1524_v6 = vpop.eup %1523  ;;  %v811_v7 = vadd.f32 1.0, %v1522_v3  ;;  %1543 = vtanh.f32 %v713_v59  ;;  %v1335_v8 = vmul.f32 -1.442695, %v691_v1  ;;  %v1343_v10 = vmul.f32 -1.442695, %v731_v2 }
 0x15a   : > { %v819_v9 = vadd.f32 1.0, %v1524_v6  ;;  %1545 = vtanh.f32 %v679_v62  ;;  %v694_v11 = vpop.f32.mrf.mxu0  ;;  %v729_v59 = vadd.f32 %v1987_v58, %v1972_v33 }
 0x15b   : > { %v734_v12 = vpop.f32.mrf.mxu1  ;;  %1547 = vrcp.f32 %v811_v7  ;;  %v695_v19 = vadd.f32 %v694_v11, %v1968_v21 }
 0x15c   : > { %v1526_v13 = vpop.eup %1525  ;;  %1549 = vrcp.f32 %v819_v9  ;;  %v1997_v14 = vpop.f32.mrf.mxu0  ;;  %v735_v23 = vadd.f32 %v734_v12, %v1968_v21  ;;  %v693_v12 = vadd.f32 %v1993_v4, %v1972_v33 }
 0x15d   : > { %v1999_v15 = vpop.f32.mrf.mxu1  ;;  %v1528_v16 = vpop.eup %1527  ;;  %v812_v17 = vadd.f32 1.0, %v1526_v13  ;;  %1551 = vpow2.f32 %v1335_v8  ;;  %v1336_v30 = vmul.f32 -1.442695, %v695_v19  ;;  %v733_v19 = vadd.f32 %v1995_v5, %v1972_v33 }
 0x15e   : > { %v820_v20 = vadd.f32 1.0, %v1528_v16  ;;  %1553 = vpow2.f32 %v1343_v10  ;;  %v700_v24 = vpop.f32.mrf.mxu0  ;;  %v1530_v25 = vpop.eup %1529  ;;  %v1344_v34 = vmul.f32 -1.442695, %v735_v23  ;;  %v699_v5 = vadd.f32 %v1997_v14, %v1972_v33 }
 0x15f   : > { %1555 = vrcp.f32 %v812_v17  ;;  %v740_v26 = vpop.f32.mrf.mxu1  ;;  %v701_v37 = vadd.f32 %v700_v24, %v1968_v21 }
 0x160   : > { %v1532_v27 = vpop.eup %1531  ;;  %1557 = vrcp.f32 %v820_v20  ;;  %v2005_v35 = vpop.f32.mrf.mxu0  ;;  %v741_v40 = vadd.f32 %v740_v26, %v1968_v21 }
 0x161   : > { %v1534_v28 = vpop.eup %1533  ;;  %1559 = vtanh.f32 %v719_v18  ;;  %v813_v29 = vadd.f32 1.0, %v1532_v27  ;;  %v2008_v38 = vpop.f32.mrf.mxu1  ;;  %v1337_v50 = vmul.f32 -1.442695, %v701_v37 }
 0x162   : > { %v1536_v31 = vpop.eup %1535  ;;  %v821_v32 = vadd.f32 1.0, %v1534_v28  ;;  %1561 = vtanh.f32 %v683_v22  ;;  %v704_v47 = vpop.f32.mrf.mxu0  ;;  %v1345_v53 = vmul.f32 -1.442695, %v741_v40 }
 0x163   : > { %v1538_v36 = vpop.eup %1537  ;;  %1563 = vrcp.f32 %v813_v29  ;;  %v744_v51 = vpop.f32.mrf.mxu1  ;;  %v705_v55 = vadd.f32 %v704_v47, %v1968_v21 }
 0x164   : > { %v1540_v39 = vpop.eup %1539  ;;  %1565 = vrcp.f32 %v821_v32  ;;  %v745_v60 = vadd.f32 %v744_v51, %v1968_v21  ;;  %v743_v51 = vadd.f32 %v2008_v38, %v1972_v33 }
 0x165   : > { %v1542_v41 = vpop.eup %1541  ;;  %v814_v43 = vadd.f32 1.0, %v1540_v39  ;;  %1567 = vpow2.f32 %v1336_v30  ;;  %v1338_v6 = vmul.f32 -1.442695, %v705_v55  ;;  %v739_v39 = vadd.f32 %v1999_v15, %v1972_v33 }
 0x166   : > { %v1544_v44 = vpop.eup %1543  ;;  %v822_v45 = vadd.f32 1.0, %v1542_v41  ;;  %1569 = vpow2.f32 %v1344_v34  ;;  %v1346_v8 = vmul.f32 -1.442695, %v745_v60 }
 0x167   : > { %v1546_v49 = vpop.eup %1545  ;;  %1571 = vrcp.f32 %v814_v43 }
 0x168   : > { %v1548_v52 = vpop.eup %1547  ;;  %1573 = vrcp.f32 %v822_v45  ;;  %v703_v45 = vadd.f32 %v2005_v35, %v1972_v33 }
 0x169   : > { %v1550_v54 = vpop.eup %1549  ;;  %1575 = vtanh.f32 %v723_v42  ;;  %v859_v56 = vmul.f32 %v1548_v52, %v1530_v25 }
 0x16a   : > { %v1552_v57 = vpop.eup %1551  ;;  %1577 = vtanh.f32 %v689_v46  ;;  %v867_v0 = vmul.f32 %v1550_v54, %v1536_v31 }
 0x16b   : > { %v1554_v61 = vpop.eup %1553  ;;  %v815_v62 = vadd.f32 1.0, %v1552_v57  ;;  %1579 = vpow2.f32 %v1337_v50  ;;  %v882_v63 = vmul.f32 %v2018_v48, %v859_v56 }
 0x16c   : > { %v1556_v1 = vpop.eup %1555  ;;  %v823_v2 = vadd.f32 1.0, %v1554_v61  ;;  %1581 = vpow2.f32 %v1345_v53  ;;  %v890_v21 = vmul.f32 %v2018_v48, %v867_v0 }
 0x16d   : > { %v1558_v3 = vpop.eup %1557  ;;  %1583 = vrcp.f32 %v815_v62  ;;  %898 = vadd.xlane.f32.xlu0 %v882_v63  ;;  %v860_v10 = vmul.f32 %v1556_v1, %v1538_v36 }
 0x16e   : > { %v1560_v7 = vpop.eup %1559  ;;  %1585 = vrcp.f32 %v823_v2  ;;  %v868_v9 = vmul.f32 %v1558_v3, %v1544_v44 }
 0x16f   : > { %v1562_v58 = vpop.eup %1561  ;;  %1587 = vtanh.f32 %v729_v59  ;;  %v883_v24 = vmul.f32 %v2018_v48, %v860_v10 }
 0x170   : > { %v1564_v11 = vpop.eup %1563  ;;  %v891_v13 = vmul.f32 %v2018_v48, %v868_v9  ;;  %1589 = vpow2.f32 %v1338_v6 }
 0x171   : > { %v1566_v16 = vpop.eup %1565  ;;  %914 = vadd.xlane.f32.xlu0 %v890_v21  ;;  %v861_v17 = vmul.f32 %v1564_v11, %v1546_v49  ;;  %1591 = vpow2.f32 %v1346_v8 }
 0x172   : > { %v1568_v18 = vpop.eup %1567  ;;  %916 = vadd.xlane.f32.xlu1 %v891_v13  ;;  %v869_v25 = vmul.f32 %v1566_v16, %v1560_v7  ;;  %1593 = vtanh.f32 %v693_v12  ;;  %v2058_v13 = vld [vmem:[#allocation2] ss:$0 sm:$0xff] }
 0x173   : > { %v1570_v20 = vpop.eup %1569  ;;  %v816_v22 = vadd.f32 1.0, %v1568_v18  ;;  %v884_v23 = vmul.f32 %v2018_v48, %v861_v17 }
 0x174   : > { %v1572_v4 = vpop.eup %1571  ;;  %v824_v26 = vadd.f32 1.0, %v1570_v20  ;;  %v892_v32 = vmul.f32 %v2018_v48, %v869_v25 }
 0x175   : > { %v1574_v27 = vpop.eup %1573  ;;  %1595 = vrcp.f32 %v816_v22  ;;  %900 = vadd.xlane.f32.xlu0 %v883_v24  ;;  %v862_v28 = vmul.f32 %v1572_v4, %v1562_v58 }
 0x176   : > { %v1576_v29 = vpop.eup %1575  ;;  %1597 = vrcp.f32 %v824_v26  ;;  %902 = vadd.xlane.f32.xlu1 %v884_v23 }
 0x177   : > { %v1578_v30 = vpop.eup %1577  ;;  %1599 = vtanh.f32 %v733_v19  ;;  %v885_v31 = vmul.f32 %v2018_v48, %v862_v28  ;;  %v870_v36 = vmul.f32 %v1576_v29, %v1574_v27 }
 0x178   : > { %v1580_v34 = vpop.eup %1579  ;;  %1601 = vtanh.f32 %v699_v5 }
 0x179   : > { %v1582_v37 = vpop.eup %1581  ;;  %v817_v40 = vadd.f32 1.0, %v1580_v34  ;;  %918 = vadd.xlane.f32.xlu0 %v892_v32  ;;  %v893_v46 = vmul.f32 %v2018_v48, %v870_v36 }
 0x17a   : > { %v1584_v41 = vpop.eup %1583  ;;  %v825_v42 = vadd.f32 1.0, %v1582_v37  ;;  %904 = vadd.xlane.f32.xlu1 %v885_v31 }
 0x17b   : > { %v1586_v14 = vpop.eup %1585  ;;  %1603 = vrcp.f32 %v817_v40  ;;  %v863_v43 = vmul.f32 %v1584_v41, %v1578_v30 }
 0x17c   : > { %v1588_v44 = vpop.eup %1587  ;;  %1605 = vrcp.f32 %v825_v42 }
 0x17d   : > { %1607 = vtanh.f32 %v739_v39  ;;  %v886_v47 = vmul.f32 %v2018_v48, %v863_v43  ;;  %v871_v15 = vmul.f32 %v1588_v44, %v1586_v14  ;;  %v1590_v49 = vpop.eup %1589 }
 0x17e   : > { %920 = vadd.xlane.f32.xlu1 %v893_v46  ;;  %v1592_v50 = vpop.eup %1591  ;;  %v818_v52 = vadd.f32 1.0, %v1590_v49  ;;  %1609 = vtanh.f32 %v703_v45 }
 0x17f   : > { %906 = vadd.xlane.f32.xlu0 %v886_v47  ;;  %v826_v53 = vadd.f32 1.0, %v1592_v50  ;;  %v1594_v54 = vpop.eup %1593  ;;  %v894_v35 = vmul.f32 %v2018_v48, %v871_v15 }
 0x180   : > { %1611 = vrcp.f32 %v818_v52 }
 0x181   : > { %1613 = vrcp.f32 %v826_v53 }
 0x182   : > { %v1596_v55 = vpop.eup %1595  ;;  %1615 = vtanh.f32 %v743_v51 }
 0x183   : > { %v1598_v56 = vpop.eup %1597  ;;  %v864_v57 = vmul.f32 %v1596_v55, %v1594_v54  ;;  %922 = vadd.xlane.f32.xlu0 %v894_v35 }
 0x184   : > { %v1600_v59 = vpop.eup %1599 }
 0x185   : > { %v887_v60 = vmul.f32 %v2018_v48, %v864_v57  ;;  %v872_v61 = vmul.f32 %v1600_v59, %v1598_v56  ;;  %v1602_v62 = vpop.eup %1601 }
 0x187   : > { %908 = vadd.xlane.f32.xlu1 %v887_v60  ;;  %v895_v63 = vmul.f32 %v2018_v48, %v872_v61 }
 0x188   : > { %v1604_v33 = vpop.eup %1603 }
 0x189   : > { %v1606_v38 = vpop.eup %1605  ;;  %v865_v0 = vmul.f32 %v1604_v33, %v1602_v62 }
 0x18a   : > { %v1608_v1 = vpop.eup %1607 }
 0x18b   : > { %924 = vadd.xlane.f32.xlu1 %v895_v63  ;;  %v888_v2 = vmul.f32 %v2018_v48, %v865_v0  ;;  %v873_v3 = vmul.f32 %v1608_v1, %v1606_v38  ;;  %v1610_v6 = vpop.eup %1609 }
 0x18d   : > { %910 = vadd.xlane.f32.xlu0 %v888_v2  ;;  %v1612_v7 = vpop.eup %1611  ;;  %v896_v58 = vmul.f32 %v2018_v48, %v873_v3 }
 0x18e   : > { %v1614_v8 = vpop.eup %1613  ;;  %v866_v9 = vmul.f32 %v1612_v7, %v1610_v6 }
 0x18f   : > { %v1616_v21 = vpop.eup %1615 }
 0x190   : > { %v889_v10 = vmul.f32 %v2018_v48, %v866_v9  ;;  %v874_v11 = vmul.f32 %v1616_v21, %v1614_v8 }
 0x191   : > { %926 = vadd.xlane.f32.xlu0 %v896_v58 }
 0x192   : > { %912 = vadd.xlane.f32.xlu1 %v889_v10  ;;  %v897_v12 = vmul.f32 %v2018_v48, %v874_v11 }
 0x196   : > { %928 = vadd.xlane.f32.xlu1 %v897_v12 }
 0x1f6   : > { %v899_v48 = vpop.xlane.xlu0 %898 }
 0x1f7   : > { %v2066_v16 = vadd.f32 %v2058_v13, %v899_v48 }
 0x1f9   : > { %954 = vst.msk [vmem:[%s2063_s26] sm:$0xff] %vm953_vm0, %v2066_v16  ;;  %v970_v15 = vsel %vm953_vm0, %v2066_v16, -inf }
 0x1fa   : > { %v915_v17 = vpop.xlane.xlu0 %914 }
 0x1fb   : > { %v917_v18 = vpop.xlane.xlu1 %916  ;;  %v2072_v19 = vadd.f32 %v2058_v13, %v915_v17 }
 0x1fc   : > { %v2075_v20 = vadd.f32 %v2058_v13, %v917_v18 }
 0x1fd   : > { %962 = vst.msk [vmem:[%s2063_s26 + $0x40] sm:$0xff] %vm953_vm0, %v2072_v19  ;;  %v982_v55 = vsel %vm953_vm0, %v2072_v19, -inf }
 0x1fe   : > { %963 = vst.msk [vmem:[%s2063_s26 + $0x48] sm:$0xff] %vm953_vm0, %v2075_v20  ;;  %v901_v22 = vpop.xlane.xlu0 %900  ;;  %v984_v54 = vsel %vm953_vm0, %v2075_v20, -inf }
 0x1ff   : > { %v903_v23 = vpop.xlane.xlu1 %902  ;;  %v2084_v24 = vadd.f32 %v2058_v13, %v901_v22 }
 0x200   : > { %v2087_v25 = vadd.f32 %v2058_v13, %v903_v23 }
 0x201   : > { %955 = vst.msk [vmem:[%s2063_s26 + $0x8] sm:$0xff] %vm953_vm0, %v2084_v24  ;;  %v971_v43 = vsel %vm953_vm0, %v2084_v24, -inf }
 0x202   : > { %956 = vst.msk [vmem:[%s2063_s26 + $0x10] sm:$0xff] %vm953_vm0, %v2087_v25  ;;  %v919_v4 = vpop.xlane.xlu0 %918  ;;  %v972_v49 = vsel %vm953_vm0, %v2087_v25, -inf }
 0x203   : > { %v905_v26 = vpop.xlane.xlu1 %904  ;;  %v2096_v27 = vadd.f32 %v2058_v13, %v919_v4 }
 0x204   : > { %v2099_v28 = vadd.f32 %v2058_v13, %v905_v26 }
 0x205   : > { %964 = vst.msk [vmem:[%s2063_s26 + $0x50] sm:$0xff] %vm953_vm0, %v2096_v27  ;;  %v986_v59 = vsel %vm953_vm0, %v2096_v27, -inf }
 0x206   : > { %957 = vst.msk [vmem:[%s2063_s26 + $0x18] sm:$0xff] %vm953_vm0, %v2099_v28  ;;  %v973_v57 = vsel %vm953_vm0, %v2099_v28, -inf }
 0x207   : > { %v921_v29 = vpop.xlane.xlu1 %920 }
 0x208   : > { %v2108_v5 = vadd.f32 %v2058_v13, %v921_v29  ;;  %v907_v30 = vpop.xlane.xlu0 %906 }
 0x209   : > { %v2111_v31 = vadd.f32 %v2058_v13, %v907_v30 }
 0x20a   : > { %965 = vst.msk [vmem:[%s2063_s26 + $0x58] sm:$0xff] %vm953_vm0, %v2108_v5  ;;  %v988_v0 = vsel %vm953_vm0, %v2108_v5, -inf }
 0x20b   : > { %958 = vst.msk [vmem:[%s2063_s26 + $0x20] sm:$0xff] %vm953_vm0, %v2111_v31  ;;  %v974_v44 = vsel %vm953_vm0, %v2111_v31, -inf }
 0x20c   : > { %v923_v32 = vpop.xlane.xlu0 %922  ;;  %v975_v51 = vmax.f32 %v970_v15, %v974_v44 }
 0x20d   : > { %v2120_v34 = vadd.f32 %v2058_v13, %v923_v32 }
 0x20e   : > { %v983_v62 = vmax.f32 %v975_v51, %v982_v55 }
 0x20f   : > { %966 = vst.msk [vmem:[%s2063_s26 + $0x60] sm:$0xff] %vm953_vm0, %v2120_v34  ;;  %v990_v1 = vsel %vm953_vm0, %v2120_v34, -inf }
 0x210   : > { %v909_v36 = vpop.xlane.xlu1 %908  ;;  %v991_v9 = vmax.f32 %v983_v62, %v990_v1 }
 0x211   : > { %v2126_v37 = vadd.f32 %v2058_v13, %v909_v36 }
 0x213   : > { %959 = vst.msk [vmem:[%s2063_s26 + $0x28] sm:$0xff] %vm953_vm0, %v2126_v37  ;;  %v976_v42 = vsel %vm953_vm0, %v2126_v37, -inf }
 0x214   : > { %v925_v39 = vpop.xlane.xlu1 %924  ;;  %v977_v46 = vmax.f32 %v971_v43, %v976_v42 }
 0x215   : > { %v2132_v40 = vadd.f32 %v2058_v13, %v925_v39 }
 0x216   : > { %v911_v41 = vpop.xlane.xlu0 %910  ;;  %v985_v56 = vmax.f32 %v977_v46, %v984_v54 }
 0x217   : > { %967 = vst.msk [vmem:[%s2063_s26 + $0x68] sm:$0xff] %vm953_vm0, %v2132_v40  ;;  %v2140_v14 = vadd.f32 %v2058_v13, %v911_v41  ;;  %v992_v60 = vsel %vm953_vm0, %v2132_v40, -inf }
 0x218   : > { %v993_v6 = vmax.f32 %v985_v56, %v992_v60 }
 0x219   : > { %960 = vst.msk [vmem:[%s2063_s26 + $0x30] sm:$0xff] %vm953_vm0, %v2140_v14  ;;  %v978_v45 = vsel %vm953_vm0, %v2140_v14, -inf }
 0x21a   : > { %v927_v47 = vpop.xlane.xlu0 %926  ;;  %v979_v52 = vmax.f32 %v972_v49, %v978_v45  ;;  %v998_v10 = vmax.f32 %v991_v9, %v993_v6 }
 0x21b   : > { %v2156_v50 = vadd.f32 %v2058_v13, %v927_v47  ;;  %v913_v53 = vpop.xlane.xlu1 %912 }
 0x21c   : > { %v2161_v35 = vadd.f32 %v2058_v13, %v913_v53  ;;  %v987_v38 = vmax.f32 %v979_v52, %v986_v59 }
 0x21d   : > { %968 = vst.msk [vmem:[%s2063_s26 + $0x70] sm:$0xff] %vm953_vm0, %v2156_v50  ;;  %v994_v2 = vsel %vm953_vm0, %v2156_v50, -inf }
 0x21e   : > { %961 = vst.msk [vmem:[%s2063_s26 + $0x38] sm:$0xff] %vm953_vm0, %v2161_v35  ;;  %v980_v61 = vsel %vm953_vm0, %v2161_v35, -inf  ;;  %v995_v58 = vmax.f32 %v987_v38, %v994_v2 }
 0x21f   : > { %v981_v33 = vmax.f32 %v973_v57, %v980_v61  ;;  %v929_v63 = vpop.xlane.xlu1 %928 }
 0x220   : > { %v2186_v3 = vadd.f32 %v2058_v13, %v929_v63 }
 0x221   : > { %v989_v7 = vmax.f32 %v981_v33, %v988_v0 }
 0x222   : > { %969 = vst.msk [vmem:[%s2063_s26 + $0x78] sm:$0xff] %vm953_vm0, %v2186_v3  ;;  %v996_v8 = vsel %vm953_vm0, %v2186_v3, -inf }
 0x223   : > { %v997_v21 = vmax.f32 %v989_v7, %v996_v8 }
 0x225   : > { %v999_v11 = vmax.f32 %v995_v58, %v997_v21 }
 0x227   : > { %v1000_v12 = vmax.f32 %v998_v10, %v999_v11 }
 0x229   : > { %v1001_v48 = vrot.slane %v1000_v12, 4 }
 0x22b   : > { %v1002_v13 = vmax.f32 %v1000_v12, %v1001_v48 }
 0x22d   : > { %v1003_v17 = vrot.slane %v1002_v13, 2 }
 0x22f   : > { %v1004_v18 = vmax.f32 %v1002_v13, %v1003_v17 }
 0x231   : > { %v1005_v22 = vrot.slane %v1004_v18, 1 }
 0x233   : > { %v2202_v23 = vmax.f32 %v1004_v18, %v1005_v22 }
 0x235   : > { %v1007_v4 = vsub.f32 %v2066_v16, %v2202_v23  ;;  %v1008_v26 = vsub.f32 %v2084_v24, %v2202_v23  ;;  %v1009_v29 = vsub.f32 %v2087_v25, %v2202_v23  ;;  %1093 = vst.msk [vmem:[%s374_s10] sm:$0x1] %vm1092_vm1, %v2202_v23  ;;  %v1010_v30 = vsub.f32 %v2099_v28, %v2202_v23 }
 0x236   : > { %v1011_v32 = vsub.f32 %v2111_v31, %v2202_v23  ;;  %v1012_v16 = vsub.f32 %v2126_v37, %v2202_v23  ;;  %v1013_v24 = vsub.f32 %v2140_v14, %v2202_v23  ;;  %v1014_v28 = vsub.f32 %v2161_v35, %v2202_v23 }
 0x237   : > { %v1023_v36 = vmul.f32 1.442695, %v1007_v4  ;;  %v1025_v39 = vmul.f32 1.442695, %v1008_v26  ;;  %v1027_v41 = vmul.f32 1.442695, %v1009_v29  ;;  %v1015_v31 = vsub.f32 %v2072_v19, %v2202_v23 }
 0x238   : > { %v1029_v42 = vmul.f32 1.442695, %v1010_v30  ;;  %v1031_v25 = vmul.f32 1.442695, %v1011_v32  ;;  %v1033_v43 = vmul.f32 1.442695, %v1012_v16  ;;  %v1016_v37 = vsub.f32 %v2075_v20, %v2202_v23 }
 0x239   : > { %1617 = vpow2.f32 %v1023_v36  ;;  %v1035_v44 = vmul.f32 1.442695, %v1013_v24  ;;  %v1037_v45 = vmul.f32 1.442695, %v1014_v28  ;;  %v1017_v14 = vsub.f32 %v2096_v27, %v2202_v23 }
 0x23a   : > { %1619 = vpow2.f32 %v1025_v39  ;;  %v1039_v46 = vmul.f32 1.442695, %v1015_v31  ;;  %v1018_v47 = vsub.f32 %v2108_v5, %v2202_v23  ;;  %v1041_v15 = vmul.f32 1.442695, %v1016_v37 }
 0x23b   : > { %1621 = vpow2.f32 %v1027_v41  ;;  %v1019_v19 = vsub.f32 %v2120_v34, %v2202_v23  ;;  %v1043_v51 = vmul.f32 1.442695, %v1017_v14  ;;  %v1020_v27 = vsub.f32 %v2132_v40, %v2202_v23 }
 0x23c   : > { %1623 = vpow2.f32 %v1029_v42  ;;  %v1045_v54 = vmul.f32 1.442695, %v1018_v47  ;;  %v1021_v56 = vsub.f32 %v2156_v50, %v2202_v23  ;;  %v1022_v61 = vsub.f32 %v2186_v3, %v2202_v23 }
 0x23d   : > { %1625 = vpow2.f32 %v1031_v25  ;;  %v1047_v34 = vmul.f32 1.442695, %v1019_v19  ;;  %v1049_v40 = vmul.f32 1.442695, %v1020_v27 }
 0x23e   : > { %1627 = vpow2.f32 %v1033_v43  ;;  %v1051_v63 = vmul.f32 1.442695, %v1021_v56  ;;  %v1053_v2 = vmul.f32 1.442695, %v1022_v61 }
 0x23f   : > { %1629 = vpow2.f32 %v1035_v44 }
 0x240   : > { %1631 = vpow2.f32 %v1037_v45 }
 0x241   : > { %1633 = vpow2.f32 %v1039_v46 }
 0x242   : > { %1635 = vpow2.f32 %v1041_v15 }
 0x243   : > { %1637 = vpow2.f32 %v1043_v51 }
 0x244   : > { %1639 = vpow2.f32 %v1045_v54 }
 0x245   : > { %1641 = vpow2.f32 %v1047_v34 }
 0x246   : > { %v1618_v49 = vpop.eup %1617  ;;  %1643 = vpow2.f32 %v1049_v40 }
 0x247   : > { %v1620_v52 = vpop.eup %1619  ;;  %v1055_v20 = vsel %vm953_vm0, %v1618_v49, 0.0  ;;  %1645 = vpow2.f32 %v1051_v63 }
 0x248   : > { %v1622_v53 = vpop.eup %1621  ;;  %v1056_v35 = vsel %vm953_vm0, %v1620_v52, 0.0  ;;  %1647 = vpow2.f32 %v1053_v2 }
 0x249   : > { %v1624_v5 = vpop.eup %1623  ;;  %v1057_v55 = vadd.f32 %v1056_v35, %v1055_v20  ;;  %v1058_v57 = vsel %vm953_vm0, %v1622_v53, 0.0 }
 0x24a   : > { %v1626_v59 = vpop.eup %1625  ;;  %v1060_v62 = vsel %vm953_vm0, %v1624_v5, 0.0 }
 0x24b   : > { %v1059_v60 = vadd.f32 %v1058_v57, %v1057_v55  ;;  %v1628_v33 = vpop.eup %1627  ;;  %v1062_v0 = vsel %vm953_vm0, %v1626_v59, 0.0 }
 0x24c   : > { %v1630_v50 = vpop.eup %1629  ;;  %v1064_v6 = vsel %vm953_vm0, %v1628_v33, 0.0 }
 0x24d   : > { %v1061_v38 = vadd.f32 %v1060_v62, %v1059_v60  ;;  %v1632_v7 = vpop.eup %1631  ;;  %v1066_v3 = vsel %vm953_vm0, %v1630_v50, 0.0 }
 0x24e   : > { %v1634_v9 = vpop.eup %1633  ;;  %v1068_v21 = vsel %vm953_vm0, %v1632_v7, 0.0 }
 0x24f   : > { %v1063_v1 = vadd.f32 %v1062_v0, %v1061_v38  ;;  %v1636_v10 = vpop.eup %1635  ;;  %v1070_v12 = vsel %vm953_vm0, %v1634_v9, 0.0 }
 0x250   : > { %v1638_v48 = vpop.eup %1637  ;;  %v1072_v17 = vsel %vm953_vm0, %v1636_v10, 0.0 }
 0x251   : > { %v1065_v8 = vadd.f32 %v1064_v6, %v1063_v1  ;;  %v1640_v18 = vpop.eup %1639  ;;  %v1074_v23 = vsel %vm953_vm0, %v1638_v48, 0.0 }
 0x252   : > { %v1642_v4 = vpop.eup %1641  ;;  %v1076_v29 = vsel %vm953_vm0, %v1640_v18, 0.0 }
 0x253   : > { %v1067_v58 = vadd.f32 %v1066_v3, %v1065_v8  ;;  %v1644_v30 = vpop.eup %1643  ;;  %v1078_v36 = vsel %vm953_vm0, %v1642_v4, 0.0 }
 0x254   : > { %v1646_v39 = vpop.eup %1645  ;;  %v1080_v16 = vsel %vm953_vm0, %v1644_v30, 0.0 }
 0x255   : > { %v1069_v11 = vadd.f32 %v1068_v21, %v1067_v58  ;;  %v1648_v42 = vpop.eup %1647  ;;  %v1082_v25 = vsel %vm953_vm0, %v1646_v39, 0.0 }
 0x256   : > { %v1084_v43 = vsel %vm953_vm0, %v1648_v42, 0.0 }
 0x257   : > { %v1071_v13 = vadd.f32 %v1070_v12, %v1069_v11 }
 0x259   : > { %v1073_v22 = vadd.f32 %v1072_v17, %v1071_v13 }
 0x25b   : > { %v1075_v26 = vadd.f32 %v1074_v23, %v1073_v22 }
 0x25d   : > { %v1077_v32 = vadd.f32 %v1076_v29, %v1075_v26 }
 0x25f   : > { %v1079_v41 = vadd.f32 %v1078_v36, %v1077_v32 }
 0x261   : > { %v1081_v24 = vadd.f32 %v1080_v16, %v1079_v41 }
 0x263   : > { %v1083_v28 = vadd.f32 %v1082_v25, %v1081_v24 }
 0x265   : > { %v1085_v31 = vadd.f32 %v1084_v43, %v1083_v28 }
 0x267   : > { %v1086_v44 = vrot.slane %v1085_v31, 4 }
 0x269   : > { %v1087_v37 = vadd.f32 %v1086_v44, %v1085_v31 }
 0x26b   : > { %v1088_v45 = vrot.slane %v1087_v37, 2 }
 0x26d   : > { %v1089_v14 = vadd.f32 %v1088_v45, %v1087_v37 }
 0x26f   : > { %v1090_v46 = vrot.slane %v1089_v14, 1 }
 0x271   : > { %v1091_v47 = vadd.f32 %v1090_v46, %v1089_v14 }
 0x273   : > { %1094 = vst.msk [vmem:[%s381_s23] sm:$0x1] %vm1092_vm1, %v1091_v47 }
 0x274 PF: > { %s2305_s25 = sld [smem:[#allocation9_spill]]  ;;  %s2308_s26 = smov %s1749_s27 }
 0x275   : > { %s2306_s11 = sld [smem:[#allocation10_spill]]  ;;  %s2309_s27 = smov %s1753_s28 }
 0x276   : > { %s2307_s12 = sld [smem:[#allocation11_spill]]  ;;  %s2310_s28 = smov %s1911_s20 }
 0x277   : > { %s2311_s29 = smov %s1765_s8  ;;  %s2312_s30 = smov %s1769_s9 }
 0x27a   : > { %s24_s10 = sadd.s32 1, %s2305_s25  }
 0x27b   : > { %p21_p11 = scmp.ge.s32.totalorder %s24_s10, 8   ;;  %s2313_s8 = smov %s2306_s11 }
 0x27c   : > { %s2314_s9 = smov %s2307_s12 }
 0x27d   :  { %23 = sbr.rel (!%p21_p11) target bundleno = 9 (0x9), region = 108 }
 0x282   :  { %1165 = vsyncpa [#allocation4], 1 }
 0x283   :  { %1167 = vsyncpa [#allocation4 + $0x1], 1 }
 0x284   :  { %1168 = vsyncpa [#allocation6], 1 }

</bundles_post_ra>
